<compile_context>
chip_gen: v7x
topology: tpu7x:2x2x1
jax: 0.10.0
libtpu: 0.0.40
codegen_flags: <defaults>
</compile_context>

<pallas_src>
import jax
import jax.numpy as jnp
from jax import lax
from jax.experimental import pallas as pl
from jax.experimental.pallas import tpu as pltpu


def _round_up(x, m):
    return (x + m - 1) // m * m


def critic_kernel(state_ref, action_ref,
                  w1s_ref, w1a_ref, b1_ref,
                  w2_ref, b2_ref,
                  w3_ref, b3_ref,
                  o_ref):
    """One batch tile of the critic forward pass."""
    cdt = w1s_ref.dtype  # MXU operand dtype (bf16); f32 accumulation throughout

    # linear1 (split matmul replaces concat([state, action], 1)) + ReLU
    h1 = jnp.dot(state_ref[...].astype(cdt), w1s_ref[...],
                 preferred_element_type=jnp.float32)
    h1 = h1 + jnp.dot(action_ref[...].astype(cdt), w1a_ref[...],
                      preferred_element_type=jnp.float32)
    h1 = jnp.maximum(h1 + b1_ref[...], 0.0)

    # linear2 + ReLU
    h2 = jnp.dot(h1.astype(cdt), w2_ref[...],
                 preferred_element_type=jnp.float32)
    h2 = jnp.maximum(h2 + b2_ref[...], 0.0)

    # linear3: contract w3 (1, H) with h2 (tb, H) over H -> (1, tb).
    # Produces a lane-dense output row (batch on lanes) so the store is an
    # unmasked full-width vst; f32 operands keep the head exact vs reference.
    q = lax.dot_general(w3_ref[...], h2,
                        dimension_numbers=(((1,), (1,)), ((), ())),
                        preferred_element_type=jnp.float32)
    o_ref[...] = q + b3_ref[0, 0]


def critic_forward(state, action, params, *, block_rows=512):
    """Batch-tiled Pallas call. Weights stay resident; batch is streamed."""
    w1s, w1a, b1, w2, b2, w3_row, b3 = params

    B, num_inputs = state.shape
    num_actions = action.shape[1]
    hidden = w2.shape[0]

    # Batch tile: 128-aligned for large batches (amortizes ~0.35us/step grid
    # overhead and keeps sublane/lane packing clean); full-array block for
    # small batches.  Guarantee >= 2 tiles when possible so v7x's two
    # TensorCores both get work via the "parallel" grid axis.
    if B >= 128:
        tb = _round_up(min(block_rows, B), 128)
        if B > 128 and pl.cdiv(B, tb) < 2:
            tb = _round_up(pl.cdiv(B, 2), 128)
    else:
        tb = B
    grid = (pl.cdiv(B, tb),)          # ragged final block: OOB writes dropped
    const = lambda i: (0, 0)          # weights / biases resident across tiles

    out = pl.pallas_call(
        critic_kernel,
        out_shape=jax.ShapeDtypeStruct((1, B), jnp.float32),
        grid=grid,
        in_specs=[
            pl.BlockSpec((tb, num_inputs), lambda i: (i, 0)),    # state tile
            pl.BlockSpec((tb, num_actions), lambda i: (i, 0)),   # action tile
            pl.BlockSpec((num_inputs, hidden), const),           # W1[:ni]
            pl.BlockSpec((num_actions, hidden), const),          # W1[ni:]
            pl.BlockSpec((1, hidden), const),                    # b1
            pl.BlockSpec((hidden, hidden), const),               # W2
            pl.BlockSpec((1, hidden), const),                    # b2
            pl.BlockSpec((1, hidden), const),                    # W3 as a row
            pl.BlockSpec(memory_space=pltpu.MemorySpace.SMEM),   # b3 scalar
        ],
        out_specs=pl.BlockSpec((1, tb), lambda i: (0, i)),       # lane-dense
        compiler_params=pltpu.CompilerParams(
            dimension_semantics=("parallel",)),  # shard batch tiles across TCs
    )(state, action, w1s, w1a, b1, w2, b2, w3_row, b3)
    return out.reshape(B, 1)


def init_critic_params(key, num_inputs, num_actions, hidden_size,
                       init_w=0.003, weight_dtype=jnp.bfloat16):
    """Deterministic init mirroring nn.Linear defaults (+ linear3 override).

    Returns kernel-layout params: W1 pre-split into state/action halves,
    W3 transposed to a (1, hidden) row; MXU weights in `weight_dtype`,
    everything touched by f32 element-wise math (biases, W3 row) kept in f32.
    """
    in1 = num_inputs + num_actions
    k = jax.random.split(key, 6)

    def unif(k_, shape, bound):
        return jax.random.uniform(k_, shape, jnp.float32, -bound, bound)

    bnd1 = 1.0 / (in1 ** 0.5)
    bnd2 = 1.0 / (hidden_size ** 0.5)
    w1 = unif(k[0], (in1, hidden_size), bnd1)
    b1 = unif(k[1], (1, hidden_size), bnd1)
    w2 = unif(k[2], (hidden_size, hidden_size), bnd2)
    b2 = unif(k[3], (1, hidden_size), bnd2)
    w3 = unif(k[4], (hidden_size, 1), init_w)   # linear3.weight.uniform_(-init_w, init_w)
    b3 = unif(k[5], (1, 1), init_w)             # linear3.bias.uniform_(-init_w, init_w)

    w1s = w1[:num_inputs].astype(weight_dtype)
    w1a = w1[num_inputs:].astype(weight_dtype)
    w2c = w2.astype(weight_dtype)
    w3_row = w3.T                               # (1, hidden), f32
    return (w1s, w1a, b1, w2c, b2, w3_row, b3)


def critic_reference(state, action, params):
    """Pure-JAX f32 reference (same weight values, f32 math throughout)."""
    w1s, w1a, b1, w2, b2, w3_row, b3 = params
    f32 = jnp.float32
    s = state.astype(f32)
    a = action.astype(f32)
    h1 = jnp.maximum(s @ w1s.astype(f32) + a @ w1a.astype(f32) + b1, 0.0)
    h2 = jnp.maximum(h1 @ w2.astype(f32) + b2, 0.0)
    return h2 @ w3_row.astype(f32).T + b3


if __name__ == "__main__":
    num_inputs, num_actions, hidden = 16, 4, 32
    key = jax.random.PRNGKey(0)
    k_s, k_a, k_p = jax.random.split(key, 3)

    params = init_critic_params(k_p, num_inputs, num_actions, hidden)

    # Case 1: small batch, bf16 activation stream (single full-array block).
    B = 64
    state = jax.random.normal(k_s, (B, num_inputs), jnp.float32).astype(jnp.bfloat16)
    action = jax.random.normal(k_a, (B, num_actions), jnp.float32).astype(jnp.bfloat16)
    out = jax.block_until_ready(critic_forward(state, action, params))
    ref = critic_reference(state, action, params)
    assert out.shape == (B, 1), out.shape
    assert jnp.allclose(out, ref, atol=5e-3, rtol=5e-2), (out, ref)

    # Case 2: ragged multi-tile batch with f32 inputs (exercises the in-kernel
    # cast, the >=2-tile split for v7x, and the masked final partial block).
    B2 = 300
    state2 = jax.random.normal(jax.random.fold_in(k_s, 1), (B2, num_inputs), jnp.float32)
    action2 = jax.random.normal(jax.random.fold_in(k_a, 1), (B2, num_actions), jnp.float32)
    out2 = jax.block_until_ready(critic_forward(state2, action2, params))
    ref2 = critic_reference(state2, action2, params)
    assert out2.shape == (B2, 1), out2.shape
    assert jnp.allclose(out2, ref2, atol=5e-3, rtol=5e-2), (out2, ref2)

    print("KERNEL_OK")
</pallas_src>

<mosaic_0001>
module attributes {stable_mosaic.version = 11 : i64} {
  func.func @critic_kernel(%arg0: i32, %arg1: memref<64x16xbf16, #tpu.memory_space<vmem>>, %arg2: memref<64x4xbf16, #tpu.memory_space<vmem>>, %arg3: memref<16x32xbf16, #tpu.memory_space<vmem>>, %arg4: memref<4x32xbf16, #tpu.memory_space<vmem>>, %arg5: memref<1x32xf32, #tpu.memory_space<vmem>>, %arg6: memref<32x32xbf16, #tpu.memory_space<vmem>>, %arg7: memref<1x32xf32, #tpu.memory_space<vmem>>, %arg8: memref<1x32xf32, #tpu.memory_space<vmem>>, %arg9: memref<1x1xf32, #tpu.memory_space<smem>>, %arg10: memref<1x64xf32, #tpu.memory_space<vmem>>) attributes {dimension_semantics = [#tpu.dimension_semantics<parallel>], iteration_bounds = array<i64: 1>, scalar_prefetch = 0 : i64, scratch_operands = 0 : i64, tpu.core_type = #tpu.core_type<tc>, window_params = [{transform_indices = @transform_0, window_bounds = array<i64: 64, 16>}, {transform_indices = @transform_1, window_bounds = array<i64: 64, 4>}, {pipeline_mode = #tpu.pipeline_mode<synchronous>, transform_indices = @transform_2, window_bounds = array<i64: 16, 32>}, {pipeline_mode = #tpu.pipeline_mode<synchronous>, transform_indices = @transform_3, window_bounds = array<i64: 4, 32>}, {pipeline_mode = #tpu.pipeline_mode<synchronous>, transform_indices = @transform_4, window_bounds = array<i64: 1, 32>}, {pipeline_mode = #tpu.pipeline_mode<synchronous>, transform_indices = @transform_5, window_bounds = array<i64: 32, 32>}, {pipeline_mode = #tpu.pipeline_mode<synchronous>, transform_indices = @transform_6, window_bounds = array<i64: 1, 32>}, {pipeline_mode = #tpu.pipeline_mode<synchronous>, transform_indices = @transform_7, window_bounds = array<i64: 1, 32>}, {transform_indices = @transform_8, window_bounds = array<i64: 1, 1>}, {transform_indices = @transform_9, window_bounds = array<i64: 1, 64>}]} {
    %c0 = arith.constant 0 : index
    %c0_0 = arith.constant 0 : index
    %0 = vector.load %arg1[%c0, %c0_0] : memref<64x16xbf16, #tpu.memory_space<vmem>>, vector<64x16xbf16>
    %c0_1 = arith.constant 0 : index
    %c0_2 = arith.constant 0 : index
    %1 = vector.load %arg3[%c0_1, %c0_2] : memref<16x32xbf16, #tpu.memory_space<vmem>>, vector<16x32xbf16>
    %cst = arith.constant dense<0.000000e+00> : vector<64x32xf32>
    %2 = tpu.matmul %0, %1, %cst {dimension_numbers = #tpu.dot_dimension_numbers<[1], [0], [0], [1], [0, 0, 1, 1], [], []>} : vector<64x16xbf16>, vector<16x32xbf16>, vector<64x32xf32> -> vector<64x32xf32>
    %c0_3 = arith.constant 0 : index
    %c0_4 = arith.constant 0 : index
    %3 = vector.load %arg2[%c0_3, %c0_4] : memref<64x4xbf16, #tpu.memory_space<vmem>>, vector<64x4xbf16>
    %c0_5 = arith.constant 0 : index
    %c0_6 = arith.constant 0 : index
    %4 = vector.load %arg4[%c0_5, %c0_6] : memref<4x32xbf16, #tpu.memory_space<vmem>>, vector<4x32xbf16>
    %cst_7 = arith.constant dense<0.000000e+00> : vector<64x32xf32>
    %5 = tpu.matmul %3, %4, %cst_7 {dimension_numbers = #tpu.dot_dimension_numbers<[1], [0], [0], [1], [0, 0, 1, 1], [], []>} : vector<64x4xbf16>, vector<4x32xbf16>, vector<64x32xf32> -> vector<64x32xf32>
    %6 = arith.addf %2, %5 : vector<64x32xf32>
    %c0_8 = arith.constant 0 : index
    %c0_9 = arith.constant 0 : index
    %7 = vector.load %arg5[%c0_8, %c0_9] : memref<1x32xf32, #tpu.memory_space<vmem>>, vector<1x32xf32>
    %8 = vector.broadcast %7 : vector<1x32xf32> to vector<64x32xf32>
    %9 = arith.addf %6, %8 : vector<64x32xf32>
    %cst_10 = arith.constant 0.000000e+00 : f32
    %10 = vector.broadcast %cst_10 : f32 to vector<64x32xf32>
    %11 = arith.maximumf %9, %10 : vector<64x32xf32>
    %12 = arith.truncf %11 : vector<64x32xf32> to vector<64x32xbf16>
    %c0_11 = arith.constant 0 : index
    %c0_12 = arith.constant 0 : index
    %13 = vector.load %arg6[%c0_11, %c0_12] : memref<32x32xbf16, #tpu.memory_space<vmem>>, vector<32x32xbf16>
    %cst_13 = arith.constant dense<0.000000e+00> : vector<64x32xf32>
    %14 = tpu.matmul %12, %13, %cst_13 {dimension_numbers = #tpu.dot_dimension_numbers<[1], [0], [0], [1], [0, 0, 1, 1], [], []>} : vector<64x32xbf16>, vector<32x32xbf16>, vector<64x32xf32> -> vector<64x32xf32>
    %c0_14 = arith.constant 0 : index
    %c0_15 = arith.constant 0 : index
    %15 = vector.load %arg7[%c0_14, %c0_15] : memref<1x32xf32, #tpu.memory_space<vmem>>, vector<1x32xf32>
    %16 = vector.broadcast %15 : vector<1x32xf32> to vector<64x32xf32>
    %17 = arith.addf %14, %16 : vector<64x32xf32>
    %cst_16 = arith.constant 0.000000e+00 : f32
    %18 = vector.broadcast %cst_16 : f32 to vector<64x32xf32>
    %19 = arith.maximumf %17, %18 : vector<64x32xf32>
    %c0_17 = arith.constant 0 : index
    %c0_18 = arith.constant 0 : index
    %20 = vector.load %arg8[%c0_17, %c0_18] : memref<1x32xf32, #tpu.memory_space<vmem>>, vector<1x32xf32>
    %cst_19 = arith.constant dense<0.000000e+00> : vector<1x64xf32>
    %21 = tpu.matmul %20, %19, %cst_19 {dimension_numbers = #tpu.dot_dimension_numbers<[1], [1], [0], [0], [0, 0, 1, 0], [], []>} : vector<1x32xf32>, vector<64x32xf32>, vector<1x64xf32> -> vector<1x64xf32>
    %c0_20 = arith.constant 0 : index
    %c0_21 = arith.constant 0 : index
    %22 = memref.load %arg9[%c0_20, %c0_21] : memref<1x1xf32, #tpu.memory_space<smem>>
    %23 = vector.broadcast %22 : f32 to vector<1x64xf32>
    %24 = arith.addf %21, %23 : vector<1x64xf32>
    %c0_22 = arith.constant 0 : index
    %c0_23 = arith.constant 0 : index
    %25 = vector.load %arg10[%c0_22, %c0_23] : memref<1x64xf32, #tpu.memory_space<vmem>>, vector<1x64xf32>
    tpu.vector_store %arg10[%c0_22, %c0_23], %24 {strides = array<i32>} : memref<1x64xf32, #tpu.memory_space<vmem>>, vector<1x64xf32>,
    return
  }
  func.func @transform_0(%arg0: i32) -> (i32, i32) {
    %c0_i32 = arith.constant 0 : i32
    %c0_i32_0 = arith.constant 0 : i32
    return %arg0, %c0_i32 : i32, i32
  }
  func.func @transform_1(%arg0: i32) -> (i32, i32) {
    %c0_i32 = arith.constant 0 : i32
    %c0_i32_0 = arith.constant 0 : i32
    return %arg0, %c0_i32 : i32, i32
  }
  func.func @transform_2(%arg0: i32) -> (i32, i32) {
    %c0_i32 = arith.constant 0 : i32
    %c0_i32_0 = arith.constant 0 : i32
    %c0_i32_1 = arith.constant 0 : i32
    return %c0_i32, %c0_i32_0 : i32, i32
  }
  func.func @transform_3(%arg0: i32) -> (i32, i32) {
    %c0_i32 = arith.constant 0 : i32
    %c0_i32_0 = arith.constant 0 : i32
    %c0_i32_1 = arith.constant 0 : i32
    return %c0_i32, %c0_i32_0 : i32, i32
  }
  func.func @transform_4(%arg0: i32) -> (i32, i32) {
    %c0_i32 = arith.constant 0 : i32
    %c0_i32_0 = arith.constant 0 : i32
    %c0_i32_1 = arith.constant 0 : i32
    return %c0_i32, %c0_i32_0 : i32, i32
  }
  func.func @transform_5(%arg0: i32) -> (i32, i32) {
    %c0_i32 = arith.constant 0 : i32
    %c0_i32_0 = arith.constant 0 : i32
    %c0_i32_1 = arith.constant 0 : i32
    return %c0_i32, %c0_i32_0 : i32, i32
  }
  func.func @transform_6(%arg0: i32) -> (i32, i32) {
    %c0_i32 = arith.constant 0 : i32
    %c0_i32_0 = arith.constant 0 : i32
    %c0_i32_1 = arith.constant 0 : i32
    return %c0_i32, %c0_i32_0 : i32, i32
  }
  func.func @transform_7(%arg0: i32) -> (i32, i32) {
    %c0_i32 = arith.constant 0 : i32
    %c0_i32_0 = arith.constant 0 : i32
    %c0_i32_1 = arith.constant 0 : i32
    return %c0_i32, %c0_i32_0 : i32, i32
  }
  func.func @transform_8(%arg0: i32) -> (i32, i32) {
    %c0_i32 = arith.constant 0 : i32
    %c0_i32_0 = arith.constant 0 : i32
    %c0_i32_1 = arith.constant 0 : i32
    return %c0_i32, %c0_i32_0 : i32, i32
  }
  func.func @transform_9(%arg0: i32) -> (i32, i32) {
    %c0_i32 = arith.constant 0 : i32
    %c0_i32_0 = arith.constant 0 : i32
    return %c0_i32, %arg0 : i32, i32
  }
}

</mosaic_0001>

<bundles_post_ra>
// kernel: tpu_custom_call.1
= control target key start
LH: loop header
LB: loop body
LE: loop exit
PB: predicated region body
PF: predicated region fallthrough
CT: control target
= control target key end

     0   :  { %vm87_vm0 = vcmask 1041408   ;;  %vm74_vm1 = vcmask 31744   ;;  %vm182_vm2 = vcmask 130048   ;;  %s819_s0 = inlined_call_operand.vmem [shape: bf16[64,16], index: 0, kind: input, shape index: {}]   ;;  %s820_s1 = inlined_call_operand.vmem [shape: bf16[64,4], index: 1, kind: input, shape index: {}]   ;;  %s821_s2 = inlined_call_operand.vmem [shape: bf16[16,32], index: 2, kind: input, shape index: {}]   ;;  %s822_s3 = inlined_call_operand.vmem [shape: bf16[4,32], index: 3, kind: input, shape index: {}]   ;;  %s823_s4 = inlined_call_operand.vmem [shape: f32[1,32], index: 4, kind: input, shape index: {}]   ;;  %s824_s5 = inlined_call_operand.vmem [shape: bf16[32,32], index: 5, kind: input, shape index: {}]   ;;  %s825_s6 = inlined_call_operand.vmem [shape: f32[1,32], index: 6, kind: input, shape index: {}]   ;;  %s826_s7 = inlined_call_operand.vmem [shape: f32[1,32], index: 7, kind: input, shape index: {}]   ;;  %s827_s8 = inlined_call_operand.<no memory space> [shape: f32[1,1], index: 8, kind: input, shape index: {}]   ;;  %s828_s9 = inlined_call_operand.hbm [shape: f32[1,64], index: 9, kind: output, shape index: {}]  }
   0x1   :  { %v53_v0 = vld [vmem:[%s822_s3] sm:$0x3]  ;;  %v652_v3 = vld [vmem:[%s820_s1 + $0x8] sm:$0xff]   ;;  %v654_v5 = vld [vmem:[%s820_s1 + $0x10] sm:$0xff]  }
   0x2   :  { %v651_v1 = vld [vmem:[%s820_s1] sm:$0xff]   ;;  %646 = vmatprep.subr.msk.bf16.mxu0 %vm87_vm0, %v53_v0  ;;  %v89_v2 = vsel %vm87_vm0, %v53_v0, 0  ;;  %v655_v6 = vld [vmem:[%s820_s1 + $0x18] sm:$0xff]  }
   0x3   :  { %572 = vmatpush3.bf16.msra.mxu0 %v89_v2  ;;  %573 = vmatprep.mubr.msk.bf16.mxu0 %vm74_vm1, %v651_v1  ;;  %v653_v4 = vld [vmem:[%s821_s2] sm:$0xff]  }
   0x4   :  { %581 = vmatprep.subr.bf16.mxu0 %v653_v4  ;;  %v656_v7 = vld [vmem:[%s819_s0] sm:$0xff]  }
   0x6   :  { %574 = vmatmul.mubr.msk.bf16.vlgmr.msra.gmra.mrb[0].mxu0 %vm74_vm1, %v652_v3 }
   0x7   :  { %582 = vmatpush3.bf16.msra.mxu0 %v653_v4  ;;  %577 = vmatprep.mubr.msk.bf16.mxu0 %vm74_vm1, %v654_v5 }
   0x8   :  { %15 = vsyncpa [#allocation4], 0  ;;  %v657_v8 = vld [vmem:[%s819_s0 + $0x8] sm:$0xff]   ;;  %v658_v9 = vld [vmem:[%s819_s0 + $0x10] sm:$0xff]   ;;  %vm310_vm3 = vcmask 261120   ;;  %v686_v42 = vmov 0.0|0.0  }
   0x9   :  { %v659_v10 = vld [vmem:[%s819_s0 + $0x18] sm:$0xff]   ;;  %v660_v11 = vld [vmem:[%s824_s5] sm:$0xff]   ;;  %v661_v12 = vld [vmem:[%s824_s5 + $0x8] sm:$0xff]   ;;  %vm687_vm4 = vmmov 0   ;;  %v688_v43 = vmov 0.0   ;;  %s689_s13 = smov [#allocation3]  }
   0xa   :  { %591 = vmatprep.subr.bf16.mxu1 %v660_v11  ;;  %v529_v13 = vld [vmem:[%s823_s4] ss:$0 sm:$0xff]  ;;  %vm788_vm5 = vmpackc.low %vm310_vm3, %vm310_vm3  ;;  %s504_s14 = sshll.u32 %s689_s13, 4  ;;  %vm496_vm6 = vcmask 516096   ;;  %s505_s14 = int_to_ptr.vmem [resolvable:$true] %s504_s14 }
   0xb   :  { %592 = vmatpush3.bf16.msra.mxu1 %v660_v11  ;;  %v530_v44 = vld [vmem:[%s825_s6] ss:$0 sm:$0xff]  ;;  %v398_v11 = vstv %s827_s8  ;;  %s662_s15 = scalar_lea.vmem %s505_s14, 16  ;;  %s666_s16 = scalar_lea.vmem %s505_s14, 32 }
   0xc   :  { %593 = vmatprep.subr.bf16.mxu1 %v661_v12  ;;  %p663_p0 = scmp.ne.s32.totalorder %s505_s14, %s662_s15  ;;  %p667_p1 = scmp.lt.s32.totalorder %s505_s14, %s505_s14 }
   0xd   :  { %p668_p2 = scmp.lt.s32.totalorder %s666_s16, %s662_s15 }
   0xe   :  { %578 = vmatmul.mubr.msk.bf16.gmra.mrb[4].mxu0 %vm74_vm1, %v655_v6 }
   0xf   :  { %583 = vmatprep.mubr.msk.bf16.mxu0 %vm182_vm2, %v656_v7  ;;  %594 = vmatpush3.bf16.msra.mxu1 %v661_v12  ;;  %p669_p3 = por %p668_p2, %p667_p1 }
  0x10   :  { %622 = vmatprep.subr.bf16.mxu1 %v686_v42 }
  0x11   :  { %p670_p4 = pnand %p669_p3, %p663_p0 }
  0x16   :  { %584 = vmatmul.mubr.msk.bf16.vlgmr.msra.gmra.mrb[0].mxu0 %vm182_vm2, %v657_v8 }
  0x17   :  { %587 = vmatprep.mubr.msk.bf16.mxu0 %vm182_vm2, %v658_v9 }
  0x1e   :  { %588 = vmatmul.mubr.msk.bf16.gmra.mrb[4].mxu0 %vm182_vm2, %v659_v10  ;;  %v396_v10 = vld [vmem:[%s826_s7] sm:$0x1] }
  0xe9   :  { %v585_v14 = vpop.f32.mrb[0].mxu0 }
  0xea   :  { %v269_v15 = vadd.f32 %v585_v14, %v529_v13  ;;  %v229_v16 = vpop.f32.mrb[1].mxu0 }
  0xeb   :  { %v267_v17 = vadd.f32 %v529_v13, %v229_v16  ;;  %v586_v18 = vpop.f32.mrb[2].mxu0 }
  0xec   :  { %v270_v19 = vadd.f32 %v586_v18, %v529_v13  ;;  %v232_v20 = vpop.f32.mrb[3].mxu0  ;;  %v277_v22 = vmax.f32 %v269_v15, 0.0 }
  0xed   :  { %v268_v21 = vadd.f32 %v529_v13, %v232_v20  ;;  %v275_v24 = vmax.f32 %v267_v17, 0.0 }
  0xee   :  { %v278_v23 = vmax.f32 %v270_v19, 0.0 }
  0xef   :  { %v276_v25 = vmax.f32 %v268_v21, 0.0 }
  0xf0   :  { %v284_v26 = vpack.c.bf16 %v278_v23, %v277_v22 }
  0xf1   :  { %v589_v27 = vpop.f32.mrb[4].mxu0  ;;  %v283_v28 = vpack.c.bf16 %v276_v25, %v275_v24 }
  0xf2   :  { %v273_v29 = vadd.f32 %v589_v27, %v529_v13  ;;  %v245_v30 = vpop.f32.mrb[5].mxu0 }
  0xf3   :  { %v271_v31 = vadd.f32 %v529_v13, %v245_v30  ;;  %v590_v32 = vpop.f32.mrb[6].mxu0  ;;  %595 = vmatprep.mubr.msk.bf16.mxu1 %vm310_vm3, %v283_v28 }
  0xf4   :  { %v274_v33 = vadd.f32 %v590_v32, %v529_v13  ;;  %v248_v34 = vpop.f32.mrb[7].mxu0  ;;  %596 = vmatmul.mubr.msk.bf16.vlgmr.msra.gmra.mrb[0].mxu1 %vm310_vm3, %v284_v26  ;;  %v281_v36 = vmax.f32 %v273_v29, 0.0 }
  0xf5   :  { %v272_v35 = vadd.f32 %v529_v13, %v248_v34  ;;  %v279_v38 = vmax.f32 %v271_v31, 0.0 }
  0xf6   :  { %v282_v37 = vmax.f32 %v274_v33, 0.0 }
  0xf7   :  { %v280_v39 = vmax.f32 %v272_v35, 0.0 }
  0xf8   :  { %v286_v40 = vpack.c.bf16 %v282_v37, %v281_v36 }
  0xf9   :  { %v285_v41 = vpack.c.bf16 %v280_v39, %v279_v38 }
  0xfb   :  { %599 = vmatprep.mubr.msk.bf16.mxu1 %vm310_vm3, %v285_v41 }
  0xfc   :  { %600 = vmatmul.mubr.msk.bf16.gmra.mrb[4].mxu1 %vm310_vm3, %v286_v40 }
  0xfd   :  { %619 = vmatprep.mubr.msk.f32.mxu1 %vm687_vm4, %v688_v43 }
 0x1c7   :  { %v597_v45 = vpop.f32.mrb[0].mxu1 }
 0x1c8   :  { %v366_v46 = vadd.f32 %v597_v45, %v530_v44  ;;  %v357_v47 = vpop.f32.mrb[1].mxu1 }
 0x1c9   :  { %v358_v48 = vadd.f32 %v530_v44, %v357_v47  ;;  %v598_v49 = vpop.f32.mrb[2].mxu1 }
 0x1ca   :  { %v369_v50 = vadd.f32 %v598_v49, %v530_v44  ;;  %v360_v51 = vpop.f32.mrb[3].mxu1  ;;  %v390_v53 = vmax.f32 %v366_v46, 0.0 }
 0x1cb   :  { %v361_v52 = vadd.f32 %v530_v44, %v360_v51  ;;  %v388_v55 = vmax.f32 %v358_v48, 0.0 }
 0x1cc   :  { %v391_v54 = vmax.f32 %v369_v50, 0.0 }
 0x1cd   :  { %v389_v56 = vmax.f32 %v361_v52, 0.0 }
 0x1ce   :  { %v627_v57 = vpack.c.bf16 %v391_v54, %v390_v53 }
 0x1cf   :  { %v623_v59 = vpack.c.bf16 %v389_v56, %v388_v55  ;;  %v601_v60 = vpop.f32.mrb[4].mxu1 }
 0x1d0   :  { %v382_v61 = vadd.f32 %v601_v60, %v530_v44  ;;  %v373_v62 = vpop.f32.mrb[5].mxu1 }
 0x1d1   :  { %v374_v63 = vadd.f32 %v530_v44, %v373_v62  ;;  %v602_v0 = vpop.f32.mrb[6].mxu1  ;;  %625 = vmatpush3.bf16.xpose.msk.msra.mxu1 %vm788_vm5, %v623_v59 }
 0x1d2   :  { %v385_v1 = vadd.f32 %v602_v0, %v530_v44  ;;  %v376_v2 = vpop.f32.mrb[7].mxu1  ;;  %626 = vmatprep.subr.bf16.mxu1 %v686_v42  ;;  %v394_v4 = vmax.f32 %v382_v61, 0.0 }
 0x1d3   :  { %v377_v3 = vadd.f32 %v530_v44, %v376_v2  ;;  %v392_v6 = vmax.f32 %v374_v63, 0.0 }
 0x1d4   :  { %v395_v5 = vmax.f32 %v385_v1, 0.0 }
 0x1d5   :  { %v393_v7 = vmax.f32 %v377_v3, 0.0 }
 0x1d6   :  { %v635_v8 = vpack.c.bf16 %v395_v5, %v394_v4 }
 0x1d7   :  { %v631_v9 = vpack.c.bf16 %v393_v7, %v392_v6 }
 0x1d9   :  { %629 = vmatpush3.bf16.xpose.msk.msra.mxu1 %vm788_vm5, %v627_v57 }
 0x1da   :  { %630 = vmatprep.subr.bf16.mxu1 %v686_v42 }
 0x1e1   :  { %633 = vmatpush3.bf16.xpose.msk.msra.mxu1 %vm788_vm5, %v631_v9 }
 0x1e2   :  { %634 = vmatprep.subr.bf16.mxu1 %v686_v42 }
 0x1e9   :  { %637 = vmatpush3.bf16.xpose.msk.msra.mxu1 %vm788_vm5, %v635_v8 }
 0x1f0   :  { %620 = vmatmul.mubr.msk.f32.vlgmr.msra.gmra.mrb[8].mxu1 %vm310_vm3, %v396_v10 }
 0x2c3   :  { %v492_v12 = vpop.f32.mrb[8].mxu1 }
 0x2c4   :  { %v493_v13 = vadd.f32 %v492_v12, %v398_v11  ;;  %v621_v14 = vpop.f32.mrb[9].mxu1 }
 0x2c6   :  { %497 = vst.msk [vmem:[#allocation3] sm:$0x1] %vm496_vm6, %v493_v13 }
 0x2c7   :  { %673 = shalt.err (!%p670_p4)
}
 0x2c8   :  { %s674_s8 = scalar_lea.hbm %s828_s9, 16 }
 0x2c9   :  { %p675_p5 = scmp.ne.s32.totalorder %s828_s9, %s674_s8  ;;  %p678_p6 = scmp.lt.u32.totalorder %s674_s8, %s828_s9 }
 0x2cb   :  { %p680_p7 = pnand %p678_p6, %p675_p5 }
 0x2cd   :  { %683 = shalt.err (!%p680_p7)
}
 0x2ce   :  { %507 = dma.vmem_to_hbm [thread:$0]  %s505_s14, 16, %s828_s9, [#allocation4]  }
 0x2cf   :  { %684 = dma.done.wait [#allocation4], 16  }
 0x2d0   :  { %685 = vsyncadd [#allocation4], 4294967280 }
 0x2d1   :  { %511 = vsyncpa [#allocation4], 1 }

</bundles_post_ra>
